<compile_context>
chip_gen: v7x
topology: tpu7x:2x2x1
jax: 0.10.0
libtpu: 0.0.40
codegen_flags: <defaults>
</compile_context>

<pallas_src>
import functools

import jax
import jax.numpy as jnp
from jax.experimental import pallas as pl
from jax.experimental.pallas import tpu as pltpu


def _round_up(x: int, m: int) -> int:
    return ((x + m - 1) // m) * m


def _proj_kernel(x_ref, w_ref, b_ref, o_ref):
    # x_ref: (TM, K) patch rows; w_ref: (K, O); b_ref: (1, O) f32; o_ref: (TM, O).
    acc = jnp.dot(x_ref[...], w_ref[...], preferred_element_type=jnp.float32)
    o_ref[...] = (acc + b_ref[...]).astype(o_ref.dtype)


@functools.partial(jax.jit, static_argnames=("patch_size", "tile_m", "stream_dtype"))
def vip_downsample(x, weight, bias, patch_size=2, tile_m=8192, stream_dtype=None):
    """Forward of ViPDownSampler.

    x: (N, C, H, W) NCHW; weight: (out_dim, C, p, p) PyTorch OIHW; bias: (out_dim,).
    Returns (N, out_dim, H//p, W//p) NCHW, matching nn.Conv2d(kernel=stride=p).
    stream_dtype: optional narrower dtype (e.g. jnp.bfloat16) for the streamed
    patches / weight; accumulation stays f32.
    """
    N, C, H, W = x.shape
    out_dim = weight.shape[0]
    p = patch_size
    Hp, Wp = H // p, W // p
    M, K = N * Hp * Wp, C * p * p

    stream = jnp.dtype(stream_dtype) if stream_dtype is not None else jnp.dtype(x.dtype)
    out_dtype = x.dtype
    in_isz = stream.itemsize
    out_isz = jnp.dtype(out_dtype).itemsize

    # --- host-side glue: im2col of non-overlapping patches, flattened in (c, ph, pw)
    # order to match weight.reshape(out_dim, C*p*p).  One extra HBM pass over x
    # (see TODO above about fusing it / going NHWC end-to-end).
    patches = x.reshape(N, C, Hp, p, Wp, p).transpose(0, 2, 4, 1, 3, 5)
    patches = patches.reshape(M, K).astype(stream)
    w_mat = weight.reshape(out_dim, K).T.astype(stream)          # (K, out_dim)
    b_mat = bias.reshape(1, out_dim).astype(jnp.float32)

    # Output width: full-extent (unpadded) below 128 lanes; lane-dense multiple of
    # 128 otherwise.
    O_pad = out_dim if out_dim < 128 else _round_up(out_dim, 128)
    if O_pad != out_dim:
        w_mat = jnp.pad(w_mat, ((0, 0), (0, O_pad - out_dim)))
        b_mat = jnp.pad(b_mat, ((0, 0), (0, O_pad - out_dim)))

    # --- tiling: even #tiles >= 2 (v7x megacore + DMA/compute overlap), sublane-
    # aligned rows, sized against the per-generation VMEM capacity.
    try:
        vmem_cap = int(pltpu.get_tpu_info().vmem_capacity_bytes)
    except Exception:                       # interpret mode / info unavailable
        vmem_cap = 64 << 20                 # conservative: v7x per-core VMEM
    vmem_budget = int(0.7 * vmem_cap)       # headroom for compiler scratch

    sublane = max(8, 32 // in_isz)          # 8 for f32, 16 for bf16, 32 for int8/fp8
    # Resident weight + bias; constant-index blocks are still double-buffered by the
    # default pipeline, so budget two copies (no per-step re-DMA happens though).
    resident = 2 * (K * O_pad * in_isz + O_pad * 4)
    row_bytes = 2 * (K * in_isz + O_pad * out_isz)   # double-buffered in + out tiles
    avail = max(vmem_budget - resident, 1 << 20)
    rows_cap = max(sublane, (int(avail // row_bytes) // sublane) * sublane)
    tm_cap = max(sublane, min(tile_m, rows_cap))

    n_tiles = max(2, pl.cdiv(M, tm_cap))
    n_tiles += n_tiles % 2                  # even split across v7x's two cores
    TM = _round_up(pl.cdiv(M, n_tiles), sublane)
    M_pad = n_tiles * TM
    if M_pad != M:
        patches = jnp.pad(patches, ((0, M_pad - M), (0, 0)))

    footprint = resident + TM * row_bytes
    vmem_limit = int(min(max(2 * footprint, 16 << 20), vmem_budget))
    vmem_limit = max(vmem_limit, footprint + (2 << 20))   # never below the real need

    cost = pl.CostEstimate(
        flops=2 * M * K * out_dim,
        transcendentals=0,
        bytes_accessed=int(M_pad * K * in_isz + K * O_pad * in_isz
                           + O_pad * 4 + M_pad * O_pad * out_isz),
    )

    out = pl.pallas_call(
        _proj_kernel,
        out_shape=jax.ShapeDtypeStruct((M_pad, O_pad), out_dtype),
        grid=(n_tiles,),
        in_specs=[
            pl.BlockSpec((TM, K), lambda i: (i, 0)),      # streamed patch tiles, K unpadded
            pl.BlockSpec((K, O_pad), lambda i: (0, 0)),   # VMEM-resident weight
            pl.BlockSpec((1, O_pad), lambda i: (0, 0)),   # VMEM-resident bias
        ],
        out_specs=pl.BlockSpec((TM, O_pad), lambda i: (i, 0)),
        compiler_params=pltpu.CompilerParams(
            dimension_semantics=("parallel",),
            vmem_limit_bytes=vmem_limit,
        ),
        cost_estimate=cost,
    )(patches, w_mat, b_mat)

    if M_pad != M or O_pad != out_dim:
        out = out[:M, :out_dim]
    # Back to the module's NCHW interface in one fused reshape+transpose.
    return out.reshape(N, Hp, Wp, out_dim).transpose(0, 3, 1, 2)


if __name__ == "__main__":
    key = jax.random.PRNGKey(0)
    k_x, k_w, k_b = jax.random.split(key, 3)

    # Small shapes consistent with the module: batch=2, in_dim=4, 16x16 spatial,
    # out_dim=32, patch_size=2.
    N, C, H, W = 2, 4, 16, 16
    out_dim, p = 32, 2

    x = jax.random.normal(k_x, (N, C, H, W), dtype=jnp.float32)
    fan_in = C * p * p
    bound = 1.0 / (fan_in ** 0.5)
    weight = jax.random.uniform(k_w, (out_dim, C, p, p), jnp.float32, -bound, bound)
    bias = jax.random.uniform(k_b, (out_dim,), jnp.float32, -bound, bound)

    # Reference: NCHW conv with kernel = stride = patch_size.
    y_ref = jax.lax.conv_general_dilated(
        x, weight, window_strides=(p, p), padding="VALID",
        dimension_numbers=("NCHW", "OIHW", "NCHW"),
    ) + bias.reshape(1, out_dim, 1, 1)

    # f32 path (default: preserves the module's numerics).
    y = jax.block_until_ready(vip_downsample(x, weight, bias, patch_size=p))
    assert y.shape == (N, out_dim, H // p, W // p), y.shape
    assert jnp.allclose(y, y_ref, atol=1e-5, rtol=1e-5)

    # bf16-streaming path (review item: halve HBM bytes of the streamed operand;
    # accumulation stays f32, so only input quantization error remains).
    y_bf16 = jax.block_until_ready(
        vip_downsample(x, weight, bias, patch_size=p, stream_dtype=jnp.bfloat16))
    assert jnp.allclose(y_bf16, y_ref, atol=5e-2, rtol=5e-2)

    print("KERNEL_OK")
</pallas_src>

<mosaic_0001>
module attributes {stable_mosaic.version = 11 : i64} {
  func.func @_proj_kernel(%arg0: i32, %arg1: memref<64x16xf32, #tpu.memory_space<vmem>>, %arg2: memref<16x32xf32, #tpu.memory_space<vmem>>, %arg3: memref<1x32xf32, #tpu.memory_space<vmem>>, %arg4: memref<64x32xf32, #tpu.memory_space<vmem>>) attributes {dimension_semantics = [#tpu.dimension_semantics<parallel>], iteration_bounds = array<i64: 2>, scalar_prefetch = 0 : i64, scratch_operands = 0 : i64, tpu.core_type = #tpu.core_type<tc>, window_params = [{transform_indices = @transform_0, window_bounds = array<i64: 64, 16>}, {pipeline_mode = #tpu.pipeline_mode<synchronous>, transform_indices = @transform_1, window_bounds = array<i64: 16, 32>}, {pipeline_mode = #tpu.pipeline_mode<synchronous>, transform_indices = @transform_2, window_bounds = array<i64: 1, 32>}, {transform_indices = @transform_3, window_bounds = array<i64: 64, 32>}]} {
    %c0 = arith.constant 0 : index
    %c0_0 = arith.constant 0 : index
    %0 = vector.load %arg1[%c0, %c0_0] : memref<64x16xf32, #tpu.memory_space<vmem>>, vector<64x16xf32>
    %c0_1 = arith.constant 0 : index
    %c0_2 = arith.constant 0 : index
    %1 = vector.load %arg2[%c0_1, %c0_2] : memref<16x32xf32, #tpu.memory_space<vmem>>, vector<16x32xf32>
    %cst = arith.constant dense<0.000000e+00> : vector<64x32xf32>
    %2 = tpu.matmul %0, %1, %cst {dimension_numbers = #tpu.dot_dimension_numbers<[1], [0], [0], [1], [0, 0, 1, 1], [], []>} : vector<64x16xf32>, vector<16x32xf32>, vector<64x32xf32> -> vector<64x32xf32>
    %c0_3 = arith.constant 0 : index
    %c0_4 = arith.constant 0 : index
    %3 = vector.load %arg3[%c0_3, %c0_4] : memref<1x32xf32, #tpu.memory_space<vmem>>, vector<1x32xf32>
    %4 = vector.broadcast %3 : vector<1x32xf32> to vector<64x32xf32>
    %5 = arith.addf %2, %4 : vector<64x32xf32>
    %c0_5 = arith.constant 0 : index
    %c0_6 = arith.constant 0 : index
    %6 = vector.load %arg4[%c0_5, %c0_6] : memref<64x32xf32, #tpu.memory_space<vmem>>, vector<64x32xf32>
    tpu.vector_store %arg4[%c0_5, %c0_6], %5 {strides = array<i32>} : memref<64x32xf32, #tpu.memory_space<vmem>>, vector<64x32xf32>,
    return
  }
  func.func @transform_0(%arg0: i32) -> (i32, i32) {
    %c0_i32 = arith.constant 0 : i32
    %c0_i32_0 = arith.constant 0 : i32
    return %arg0, %c0_i32 : i32, i32
  }
  func.func @transform_1(%arg0: i32) -> (i32, i32) {
    %c0_i32 = arith.constant 0 : i32
    %c0_i32_0 = arith.constant 0 : i32
    %c0_i32_1 = arith.constant 0 : i32
    return %c0_i32, %c0_i32_0 : i32, i32
  }
  func.func @transform_2(%arg0: i32) -> (i32, i32) {
    %c0_i32 = arith.constant 0 : i32
    %c0_i32_0 = arith.constant 0 : i32
    %c0_i32_1 = arith.constant 0 : i32
    return %c0_i32, %c0_i32_0 : i32, i32
  }
  func.func @transform_3(%arg0: i32) -> (i32, i32) {
    %c0_i32 = arith.constant 0 : i32
    %c0_i32_0 = arith.constant 0 : i32
    return %arg0, %c0_i32 : i32, i32
  }
}

</mosaic_0001>

<bundles_post_ra>
// kernel: vip_downsample.1
= control target key start
LH: loop header
LB: loop body
LE: loop exit
PB: predicated region body
PF: predicated region fallthrough
CT: control target
= control target key end

     0   :  { %8 = vsyncpa [#allocation3], 0  ;;  %s717_s0 = inlined_call_operand.vmem [shape: f32[128,16], index: 0, kind: input, shape index: {}]   ;;  %s718_s1 = inlined_call_operand.vmem [shape: f32[16,32], index: 1, kind: input, shape index: {}]   ;;  %s719_s2 = inlined_call_operand.vmem [shape: f32[1,32], index: 2, kind: input, shape index: {}]   ;;  %s720_s3 = inlined_call_operand.hbm [shape: f32[128,32], index: 3, kind: output, shape index: {}]  }
   0x1   :  { %10 = vsyncpa [#allocation3 + $0x1], 0  ;;  %s586_s12 = smov 0   ;;  %s588_s13 = smov 0  }
   0x2   :  { %s590_s14 = smov 0   ;;  %s592_s15 = smov 0  }
   0x3 LB: > { %s607_s16 = sadd.s32 4294967295, %s561_s15   ;;  %s404_s17 = sadd.s32 4294967294, %s561_s15   ;;  %s561_s15 = sphi %s592_s15, %s726_s15   ;;  %s557_s14 = sphi %s590_s14, %s725_s14   ;;  %s553_s13 = sphi %s588_s13, %s724_s13   ;;  %s549_s12 = sphi %s586_s12, %s723_s12  }
   0x4   : > { %s611_s18 = sadd.s32 1, %s561_s15   ;;  %s91_s19 = sadd.s32 1, %s557_s14 }
   0x5   : > { %s88_s20 = ssub.s32 %s561_s15, %s611_s18  ;;  %p101_p0 = scmp.ne.s32.totalorder %s557_s14, %s553_s13 }
   0x6   : > { %p89_p1 = scmp.eq.s32.totalorder %s88_s20, 0  ;;  %p102_p2 = scmp.eq.s32.totalorder %s607_s16, 1 }
   0x7   : > { %p107_p3 = scmp.ne.s32.totalorder %s553_s13, %s549_s12  ;;  %p108_p4 = scmp.eq.s32.totalorder %s404_s17, 1 }
   0x8   : > { %s622_s21 = scalar_select %p89_p1, %s557_s14, %s91_s19  }
   0x9   : > { %p624_p5 = por %p102_p2, %p101_p0  ;;  %p628_p6 = por %p108_p4, %p107_p3 }
   0xa   : > { %p407_p7 = scmp.ge.s32.totalorder %s561_s15, 1  ;;  %p141_p8 = scmp.lt.s32.totalorder %s561_s15, 3 }
   0xc   : > { %p142_p9 = pnand %p407_p7, %p141_p8 }
   0xd   : > { %v180_v0 = vld [vmem:[%s718_s1] sm:$0xff] (!%p142_p9)  ;;  %v181_v1 = vld [vmem:[%s718_s1 + $0x8] sm:$0xff] (!%p142_p9)  ;;  %s409_s28 = sshll.u32 (!%p142_p9), %s607_s16, 3  ;;  %vm189_vm0 = vcmask (!%p142_p9), 130048   ;;  %s162_s6 = sand.u32 (!%p142_p9), 1, %s553_s13   ;;  %vm319_vm1 = vcmask (!%p142_p9), 261120  }
   0xe   : > { %145 = sbr.rel (%p142_p9) target bundleno = 261 (0x105), region = 32  ;;  %v452_v2 = vpack.c.bf16 (!%p142_p9), %v181_v1, %v180_v0  ;;  %p166_p10 = scmp.lt.s32.totalorder (!%p142_p9), %s409_s28, 15  ;;  %v411_v11 = vld [vmem:[%s719_s2] ss:$0 sm:$0xff] (!%p142_p9) }
   0xf   : > { %s408_s7 = sshll.u32 (!%p142_p9), %s162_s6, 6  ;;  %s425_s10 = sshll.u32 (!%p142_p9), %s607_s16, 10 }
  0x10   : > { %453 = vmatprep.subr.bf16.mxu0 (!%p142_p9), %v452_v2  ;;  %456 = vmatprep.subr.bf16.mxu1 (!%p142_p9), %v452_v2  ;;  %s164_s11 = scalar_lea.vmem (!%p142_p9), [#allocation2], %s408_s7  ;;  %s666_s20 = scalar_lea.hbm (!%p142_p9), %s720_s3, %s425_s10 }
  0x11   : > { %455 = vmatpush3.bf16.msra.mxu0 (!%p142_p9), %v452_v2  ;;  %457 = vmatpush3.bf16.msra.mxu1 (!%p142_p9), %v452_v2  ;;  %s342_s17 = sshll.u32 (!%p142_p9), %s164_s11, 4  ;;  %s676_s24 = scalar_lea.sflag (!%p142_p9), [#allocation3], %s162_s6  ;;  %s668_s17 = int_to_ptr.vmem [resolvable:$true] %s342_s17 }
  0x12   : > { %s499_s25 = scalar_lea.vmem (!%p142_p9), %s668_s17, 1024  ;;  %s563_s26 = smov (!%p142_p9), [#allocation2]  }
  0x13   : > { %p500_p11 = scmp.ne.s32.totalorder (!%p142_p9), %s668_s17, %s499_s25  ;;  %s503_s27 = sshll.u32 (!%p142_p9), %s563_s26, 4  ;;  %s504_s27 = int_to_ptr.vmem [resolvable:$false] %s503_s27 }
  0x14   : > { %p506_p0 = scmp.lt.s32.totalorder (!%p142_p9), %s668_s17, %s504_s27 }
  0x15   : > { %s728_s28 = smov (!%p166_p10, %s409_s28), 15  ;;  %p501_p12 = pnand %p500_p11, %p624_p5 }
  0x16   : > { %s410_s29 = sshll.u32 %s728_s28, 3  ;;  %s505_s28 = scalar_lea.vmem %s504_s27, 2048 }
  0x17   : > { %s169_s5 = scalar_lea.vmem %s717_s0, %s410_s29  ;;  %p502_p13 = pneg %p501_p12 }
  0x18   : > { %v172_v3 = vld [vmem:[%s169_s5] sm:$0xff]  ;;  %v173_v5 = vld [vmem:[%s169_s5 + $0x8] sm:$0xff]  ;;  %v174_v7 = vld [vmem:[%s169_s5 + $0x10] sm:$0xff]  ;;  %p507_p1 = scmp.lt.s32.totalorder %s505_s28, %s499_s25 }
  0x19   : > { %v176_v4 = vld [vmem:[%s169_s5 + $0x20] sm:$0xff]  ;;  %440 = vmatprep.mubr.msk.f32.mxu0 %vm189_vm0, %v172_v3  ;;  %v177_v6 = vld [vmem:[%s169_s5 + $0x28] sm:$0xff]  ;;  %v178_v8 = vld [vmem:[%s169_s5 + $0x30] sm:$0xff] }
  0x1a   : > { %446 = vmatprep.mubr.msk.f32.mxu1 %vm189_vm0, %v176_v4  ;;  %441 = vmatmul.mubr.msk.f32.vlgmr.msra.gmra.mrb[0].mxu0 %vm189_vm0, %v173_v5  ;;  %v175_v9 = vld [vmem:[%s169_s5 + $0x18] sm:$0xff]  ;;  %p508_p2 = por %p507_p1, %p506_p0 }
  0x1b   : > { %447 = vmatmul.mubr.msk.f32.vlgmr.msra.gmra.mrb[0].mxu1 %vm189_vm0, %v177_v6  ;;  %443 = vmatprep.mubr.msk.f32.mxu0 %vm189_vm0, %v174_v7  ;;  %v179_v10 = vld [vmem:[%s169_s5 + $0x38] sm:$0xff] }
  0x1c   : > { %449 = vmatprep.mubr.msk.f32.mxu1 %vm189_vm0, %v178_v8  ;;  %p509_p3 = pnand %p508_p2, %p502_p13 }
  0x1e   : > { %444 = vmatmul.mubr.msk.f32.gmra.mrb[2].mxu0 %vm189_vm0, %v175_v9 }
  0x1f   : > { %450 = vmatmul.mubr.msk.f32.gmra.mrb[2].mxu1 %vm189_vm0, %v179_v10 }
  0xed   : > { %v442_v12 = vpop.f32.mrb[0].mxu0 }
  0xee   : > { %v448_v13 = vpop.f32.mrb[0].mxu1  ;;  %v286_v14 = vadd.f32 %v442_v12, %v411_v11  ;;  %v280_v16 = vpop.f32.mrb[1].mxu0 }
  0xef   : > { %v306_v15 = vadd.f32 %v448_v13, %v411_v11  ;;  %v300_v17 = vpop.f32.mrb[1].mxu1  ;;  %v281_v18 = vadd.f32 %v411_v11, %v280_v16 }
  0xf0   : > { %v301_v19 = vadd.f32 %v411_v11, %v300_v17  ;;  %321 = vst.msk [vmem:[%s164_s11 + $0x8] sm:$0xff] %vm319_vm1, %v286_v14 }
  0xf1   : > { %325 = vst.msk [vmem:[%s164_s11 + $0x28] sm:$0xff] %vm319_vm1, %v306_v15  ;;  %320 = vst.msk [vmem:[%s164_s11] sm:$0xff] %vm319_vm1, %v281_v18  ;;  %v445_v20 = vpop.f32.mrb[2].mxu0 }
  0xf2   : > { %324 = vst.msk [vmem:[%s164_s11 + $0x20] sm:$0xff] %vm319_vm1, %v301_v19  ;;  %v451_v21 = vpop.f32.mrb[2].mxu1  ;;  %v296_v22 = vadd.f32 %v445_v20, %v411_v11  ;;  %v290_v24 = vpop.f32.mrb[3].mxu0 }
  0xf3   : > { %v316_v23 = vadd.f32 %v451_v21, %v411_v11  ;;  %v310_v25 = vpop.f32.mrb[3].mxu1  ;;  %v291_v26 = vadd.f32 %v411_v11, %v290_v24 }
  0xf4   : > { %v311_v27 = vadd.f32 %v411_v11, %v310_v25  ;;  %323 = vst.msk [vmem:[%s164_s11 + $0x18] sm:$0xff] %vm319_vm1, %v296_v22 }
  0xf5   : > { %327 = vst.msk [vmem:[%s164_s11 + $0x38] sm:$0xff] %vm319_vm1, %v316_v23  ;;  %322 = vst.msk [vmem:[%s164_s11 + $0x10] sm:$0xff] %vm319_vm1, %v291_v26 }
  0xf6   : > { %326 = vst.msk [vmem:[%s164_s11 + $0x30] sm:$0xff] %vm319_vm1, %v311_v27 }
  0xf7   : > { %512 = shalt.err (!%p509_p3)
}
  0xf8   : > { %s513_s29 = scalar_lea.hbm %s666_s20, 1024  ;;  %s517_s5 = scalar_lea.hbm %s720_s3, 2048 }
  0xf9   : > { %p514_p4 = scmp.ne.s32.totalorder %s666_s20, %s513_s29  ;;  %p518_p9 = scmp.lt.u32.totalorder %s666_s20, %s720_s3 }
  0xfa   : > { %p519_p10 = scmp.lt.u32.totalorder %s517_s5, %s513_s29  ;;  %p521_p12 = scmp.lt.u32.totalorder %s513_s29, %s666_s20 }
  0xfb   : > { %p515_p7 = pnand %p514_p4, %p624_p5 }
  0xfc   : > { %p520_p11 = por %p519_p10, %p518_p9 }
  0xfd   : > { %p516_p8 = pneg %p515_p7 }
  0xfe   : > { %p522_p13 = por %p521_p12, %p520_p11 }
 0x100   : > { %p523_p0 = pnand %p522_p13, %p516_p8 }
 0x102   : > { %526 = shalt.err (!%p523_p0)
}
 0x103   : > { %s564_s8 = smov 128   ;;  %s565_s9 = smov 8  }
 0x104   : > { %458 = dma.vmem_to_hbm [thread:$0]  (%p624_p5), %s668_s17, 1024, %s666_s20, %s676_s24, %s564_s8, %s564_s8, %s565_s9  }
 0x105 PF: > { %p464_p1 = scmp.ge.s32.totalorder %s561_s15, 2  ;;  %s357_s10 = sand.u32 1, %s549_s12  }
 0x106   : > { %s358_s11 = scalar_lea.sflag [#allocation3], %s357_s10 }
 0x107   : > { %p461_p2 = pnand %p464_p1, %p628_p6 }
 0x109   : > { %544 = dma.done.wait (!%p461_p2), %s358_s11, 1024  }
 0x10a   : > { %546 = vsyncadd (!%p461_p2), %s358_s11, 4294966272  ;;  %p13_p3 = scmp.ge.s32.totalorder %s611_s18, 4   ;;  %s723_s12 = smov %s553_s13 }
 0x10b   : > { %s724_s13 = smov %s557_s14  ;;  %s725_s14 = smov %s622_s21 }
 0x10c   : > { %s726_s15 = smov %s611_s18  ;;  %15 = sbr.rel (!%p13_p3) target bundleno = 3 (0x3), region = 67 }
 0x113   :  { %363 = vsyncpa [#allocation3], 1 }
 0x114   :  { %365 = vsyncpa [#allocation3 + $0x1], 1 }

</bundles_post_ra>
